<compile_context>
chip_gen: v7x
topology: tpu7x:2x2x1
jax: 0.10.0
libtpu: 0.0.40
codegen_flags: <defaults>
</compile_context>

<pallas_src>
import jax
import jax.numpy as jnp
from jax.experimental import pallas as pl
from jax.experimental.pallas import tpu as pltpu


def _round_up(v, m):
    return ((v + m - 1) // m) * m


def moe_kernel(x_ref, wg_ref, bg_ref, w1_ref, b1_ref, w2_ref, b2_ref,
               o_ref, gate_ref):
    """Grid = (batch_tiles, num_experts); expert axis innermost ('arbitrary').

    Per grid step: one batch tile of x and ONE expert's weights (expert dim
    squeezed by the BlockSpec).  The gate is computed once per batch tile
    (expert step 0), cached in VMEM scratch, and each expert step accumulates
    its gate-weighted column into the resident (lane-padded) output tile.
    """
    e = pl.program_id(1)

    # ---- gating network: softmax(x @ Wg + bg), once per batch tile ---------
    @pl.when(e == 0)
    def _():
        x0 = x_ref[...]
        logits = jnp.dot(x0, wg_ref[...],
                         preferred_element_type=jnp.float32) + bg_ref[...]
        m = jnp.max(logits, axis=-1, keepdims=True)
        p = jnp.exp(logits - m)
        denom = jnp.sum(p, axis=-1, keepdims=True)
        gate_ref[...] = p * pl.reciprocal(denom, approx=True)   # EUP slot
        o_ref[...] = jnp.zeros_like(o_ref)                      # init accumulator

    # ---- this expert: Linear -> ReLU -> Linear (one weight tile in VMEM) ---
    x = x_ref[...]
    h = jnp.dot(x, w1_ref[...], preferred_element_type=jnp.float32) + b1_ref[...]
    h = jnp.maximum(h, 0.0)
    y = jnp.dot(h.astype(w2_ref.dtype), w2_ref[...],
                preferred_element_type=jnp.float32) + b2_ref[...]   # (TB, D_out)

    # ---- fused combine, matching torch.matmul(gate.unsqueeze(-2),
    #      stack(expert_outs, -1)).squeeze(-2):
    #      out[b, e] = sum_j gate[b, j] * y_e[b, j]
    col = jnp.sum(gate_ref[...] * y, axis=-1, keepdims=True)        # (TB, 1)
    lane = jax.lax.broadcasted_iota(jnp.int32, o_ref.shape, 1)
    o_ref[...] += jnp.where(lane == e, col, 0.0)                    # dense tile


def moe_forward(x, params, *, batch_tile=None):
    wg, bg = params["wg"], params["bg"]
    w1, b1 = params["w1"], params["b1"]
    w2, b2 = params["w2"], params["b2"]

    num_experts, d_in, hidden = w1.shape
    d_out = w2.shape[-1]
    if d_out != num_experts:
        raise ValueError(
            "Reference MoE combine (gate @ stacked expert outputs) is only "
            f"shape-valid when output_dim == num_experts; got output_dim="
            f"{d_out}, num_experts={num_experts}.")

    batch = x.shape[0]
    # MXU-friendly 128-row batch tiles when the batch is big enough; otherwise
    # the 8-aligned padded batch itself (sublane constraint).
    if batch_tile is None:
        batch_tile = 128 if batch >= 128 else _round_up(batch, 8)
    b_pad = _round_up(batch, batch_tile)
    if b_pad != batch:
        x = jnp.pad(x, ((0, b_pad - batch), (0, 0)))

    # Lane-dense output slab: pad the small output dim up to a 128 multiple so
    # the HBM store is an unmasked full-lane vst; slice the pad off afterwards.
    out_lanes = _round_up(d_out, 128)

    grid = (b_pad // batch_tile, num_experts)

    flops = (2 * b_pad * d_in * num_experts
             + num_experts * 2 * b_pad * (d_in * hidden + hidden * d_out)
             + 2 * b_pad * num_experts * d_out)
    bytes_accessed = sum(int(a.size) * a.dtype.itemsize
                         for a in (x, wg, bg, w1, b1, w2, b2))
    bytes_accessed += b_pad * out_lanes * 4
    cost = pl.CostEstimate(flops=int(flops),
                           transcendentals=int(b_pad * num_experts),
                           bytes_accessed=int(bytes_accessed))

    out_padded = pl.pallas_call(
        moe_kernel,
        out_shape=jax.ShapeDtypeStruct((b_pad, out_lanes), jnp.float32),
        grid_spec=pltpu.PrefetchScalarGridSpec(
            num_scalar_prefetch=0,
            grid=grid,
            in_specs=[
                # x: one batch tile, reused across the expert axis.
                pl.BlockSpec((batch_tile, d_in), lambda i, e: (i, 0)),
                # gating weights: tiny, constant block -> fetched once.
                pl.BlockSpec((d_in, num_experts), lambda i, e: (0, 0)),
                pl.BlockSpec((1, num_experts), lambda i, e: (0, 0)),
                # expert weights: stream ONE expert's tile per grid step.
                pl.BlockSpec((pl.Squeezed(), d_in, hidden), lambda i, e: (e, 0, 0)),
                pl.BlockSpec((pl.Squeezed(), 1, hidden), lambda i, e: (e, 0, 0)),
                pl.BlockSpec((pl.Squeezed(), hidden, d_out), lambda i, e: (e, 0, 0)),
                pl.BlockSpec((pl.Squeezed(), 1, d_out), lambda i, e: (e, 0, 0)),
            ],
            # Output tile resident across the expert (reduction) axis.
            out_specs=pl.BlockSpec((batch_tile, out_lanes), lambda i, e: (i, 0)),
            scratch_shapes=[pltpu.VMEM((batch_tile, num_experts), jnp.float32)],
        ),
        compiler_params=pltpu.CompilerParams(
            dimension_semantics=("parallel", "arbitrary"),
            vmem_limit_bytes=32 * 1024 * 1024,
        ),
        cost_estimate=cost,
    )(x, wg, bg, w1, b1, w2, b2)

    return out_padded[:batch, :d_out]


def moe_reference(x, params):
    """Pure-JAX reference matching the PyTorch forward semantics."""
    logits = x @ params["wg"] + params["bg"]
    gate = jax.nn.softmax(logits, axis=-1)                            # (B, E)
    ys = []
    for ei in range(params["w1"].shape[0]):
        h = jax.nn.relu(x @ params["w1"][ei] + params["b1"][ei])
        ys.append(h @ params["w2"][ei] + params["b2"][ei])            # (B, D_out)
    expert_outputs = jnp.stack(ys, axis=-1)                           # (B, D_out, E)
    out = jnp.matmul(gate[:, None, :], expert_outputs)[:, 0, :]       # (B, D_out)
    return out


def init_params(key, num_experts, input_dim, output_dim, hidden_dim):
    ks = jax.random.split(key, 6)
    scale = 0.1
    return {
        "wg": (scale * jax.random.normal(ks[0], (input_dim, num_experts))
               ).astype(jnp.float32),
        "bg": (scale * jax.random.normal(ks[1], (1, num_experts))
               ).astype(jnp.float32),
        "w1": (scale * jax.random.normal(ks[2], (num_experts, input_dim, hidden_dim))
               ).astype(jnp.float32),
        "b1": (scale * jax.random.normal(ks[3], (num_experts, 1, hidden_dim))
               ).astype(jnp.float32),
        "w2": (scale * jax.random.normal(ks[4], (num_experts, hidden_dim, output_dim))
               ).astype(jnp.float32),
        "b2": (scale * jax.random.normal(ks[5], (num_experts, 1, output_dim))
               ).astype(jnp.float32),
    }


if __name__ == "__main__":
    # Small shapes consistent with the module; output_dim == num_experts is
    # required by the reference forward's matmul contraction.
    batch, num_experts, input_dim, output_dim, hidden_dim = 8, 4, 32, 4, 64

    key = jax.random.PRNGKey(0)
    pkey, xkey = jax.random.split(key)
    params = init_params(pkey, num_experts, input_dim, output_dim, hidden_dim)
    x = jax.random.normal(xkey, (batch, input_dim), dtype=jnp.float32)

    out = moe_forward(x, params)
    jax.block_until_ready(out)

    ref = moe_reference(x, params)
    assert out.shape == (batch, output_dim), out.shape
    # approx reciprocal in the softmax denominator -> slightly looser tolerance.
    assert jnp.allclose(out, ref, atol=1e-3, rtol=1e-3), (
        float(jnp.max(jnp.abs(out - ref))))
    print("KERNEL_OK")
</pallas_src>

<mosaic_0001>
module attributes {stable_mosaic.version = 11 : i64} {
  func.func @moe_kernel(%arg0: i32, %arg1: i32, %arg2: memref<8x32xf32, #tpu.memory_space<vmem>>, %arg3: memref<32x4xf32, #tpu.memory_space<vmem>>, %arg4: memref<1x4xf32, #tpu.memory_space<vmem>>, %arg5: memref<1x32x64xf32, #tpu.memory_space<vmem>>, %arg6: memref<1x1x64xf32, #tpu.memory_space<vmem>>, %arg7: memref<1x64x4xf32, #tpu.memory_space<vmem>>, %arg8: memref<1x1x4xf32, #tpu.memory_space<vmem>>, %arg9: memref<8x128xf32, #tpu.memory_space<vmem>>, %arg10: memref<8x4xf32, #tpu.memory_space<vmem>>) attributes {dimension_semantics = [#tpu.dimension_semantics<parallel>, #tpu.dimension_semantics<arbitrary>], iteration_bounds = array<i64: 1, 4>, scalar_prefetch = 0 : i64, scratch_operands = 1 : i64, tpu.core_type = #tpu.core_type<tc>, window_params = [{transform_indices = @transform_0, window_bounds = array<i64: 8, 32>}, {pipeline_mode = #tpu.pipeline_mode<synchronous>, transform_indices = @transform_1, window_bounds = array<i64: 32, 4>}, {pipeline_mode = #tpu.pipeline_mode<synchronous>, transform_indices = @transform_2, window_bounds = array<i64: 1, 4>}, {transform_indices = @transform_3, window_bounds = array<i64: 1, 32, 64>}, {transform_indices = @transform_4, window_bounds = array<i64: 1, 1, 64>}, {transform_indices = @transform_5, window_bounds = array<i64: 1, 64, 4>}, {transform_indices = @transform_6, window_bounds = array<i64: 1, 1, 4>}, {transform_indices = @transform_7, window_bounds = array<i64: 8, 128>}]} {
    %c0_i32 = arith.constant 0 : i32
    %0 = arith.cmpi eq, %arg1, %c0_i32 : i32
    %1 = arith.extui %0 : i1 to i32
    %c0_i32_0 = arith.constant 0 : i32
    %2 = arith.cmpi ne, %1, %c0_i32_0 : i32
    scf.if %2 {
      %c0_24 = arith.constant 0 : index
      %c0_25 = arith.constant 0 : index
      %34 = vector.load %arg2[%c0_24, %c0_25] : memref<8x32xf32, #tpu.memory_space<vmem>>, vector<8x32xf32>
      %c0_26 = arith.constant 0 : index
      %c0_27 = arith.constant 0 : index
      %35 = vector.load %arg3[%c0_26, %c0_27] : memref<32x4xf32, #tpu.memory_space<vmem>>, vector<32x4xf32>
      %cst_28 = arith.constant dense<0.000000e+00> : vector<8x4xf32>
      %36 = tpu.matmul %34, %35, %cst_28 {dimension_numbers = #tpu.dot_dimension_numbers<[1], [0], [0], [1], [0, 0, 1, 1], [], []>} : vector<8x32xf32>, vector<32x4xf32>, vector<8x4xf32> -> vector<8x4xf32>
      %c0_29 = arith.constant 0 : index
      %c0_30 = arith.constant 0 : index
      %37 = vector.load %arg4[%c0_29, %c0_30] : memref<1x4xf32, #tpu.memory_space<vmem>>, vector<1x4xf32>
      %38 = vector.broadcast %37 : vector<1x4xf32> to vector<8x4xf32>
      %39 = arith.addf %36, %38 : vector<8x4xf32>
      %cst_31 = arith.constant dense<0xFF800000> : vector<8xf32>
      %40 = vector.multi_reduction <maximumf>, %39, %cst_31 [1] : vector<8x4xf32> to vector<8xf32>
      %41 = vector.shape_cast %40 : vector<8xf32> to vector<8x1xf32>
      %42 = vector.broadcast %41 : vector<8x1xf32> to vector<8x4xf32>
      %43 = arith.subf %39, %42 : vector<8x4xf32>
      %44 = math.exp %43 : vector<8x4xf32>
      %cst_32 = arith.constant dense<0.000000e+00> : vector<8xf32>
      %45 = vector.multi_reduction <add>, %44, %cst_32 [1] : vector<8x4xf32> to vector<8xf32>
      %46 = vector.shape_cast %45 : vector<8xf32> to vector<8x1xf32>
      %47 = tpu.reciprocal %46 {approx = true} : vector<8x1xf32> -> vector<8x1xf32>
      %48 = vector.broadcast %47 : vector<8x1xf32> to vector<8x4xf32>
      %49 = arith.mulf %44, %48 : vector<8x4xf32>
      %c0_33 = arith.constant 0 : index
      %c0_34 = arith.constant 0 : index
      %50 = vector.load %arg10[%c0_33, %c0_34] : memref<8x4xf32, #tpu.memory_space<vmem>>, vector<8x4xf32>
      tpu.vector_store %arg10[%c0_33, %c0_34], %49 {strides = array<i32>} : memref<8x4xf32, #tpu.memory_space<vmem>>, vector<8x4xf32>,
      %cst_35 = arith.constant 0.000000e+00 : f32
      %51 = vector.broadcast %cst_35 : f32 to vector<8x128xf32>
      %c0_36 = arith.constant 0 : index
      %c0_37 = arith.constant 0 : index
      %52 = vector.load %arg9[%c0_36, %c0_37] : memref<8x128xf32, #tpu.memory_space<vmem>>, vector<8x128xf32>
      tpu.vector_store %arg9[%c0_36, %c0_37], %51 {strides = array<i32>} : memref<8x128xf32, #tpu.memory_space<vmem>>, vector<8x128xf32>,
    } else {
    }
    %c0 = arith.constant 0 : index
    %c0_1 = arith.constant 0 : index
    %3 = vector.load %arg2[%c0, %c0_1] : memref<8x32xf32, #tpu.memory_space<vmem>>, vector<8x32xf32>
    %c0_2 = arith.constant 0 : index
    %c0_3 = arith.constant 0 : index
    %c0_4 = arith.constant 0 : index
    %4 = vector.load %arg5[%c0_2, %c0_3, %c0_4] : memref<1x32x64xf32, #tpu.memory_space<vmem>>, vector<1x32x64xf32>
    %5 = vector.shape_cast %4 : vector<1x32x64xf32> to vector<32x64xf32>
    %cst = arith.constant dense<0.000000e+00> : vector<8x64xf32>
    %6 = tpu.matmul %3, %5, %cst {dimension_numbers = #tpu.dot_dimension_numbers<[1], [0], [0], [1], [0, 0, 1, 1], [], []>} : vector<8x32xf32>, vector<32x64xf32>, vector<8x64xf32> -> vector<8x64xf32>
    %c0_5 = arith.constant 0 : index
    %c0_6 = arith.constant 0 : index
    %c0_7 = arith.constant 0 : index
    %7 = vector.load %arg6[%c0_5, %c0_6, %c0_7] : memref<1x1x64xf32, #tpu.memory_space<vmem>>, vector<1x1x64xf32>
    %8 = vector.shape_cast %7 : vector<1x1x64xf32> to vector<1x64xf32>
    %9 = vector.broadcast %8 : vector<1x64xf32> to vector<8x64xf32>
    %10 = arith.addf %6, %9 : vector<8x64xf32>
    %cst_8 = arith.constant 0.000000e+00 : f32
    %11 = vector.broadcast %cst_8 : f32 to vector<8x64xf32>
    %12 = arith.maximumf %10, %11 : vector<8x64xf32>
    %c0_9 = arith.constant 0 : index
    %c0_10 = arith.constant 0 : index
    %c0_11 = arith.constant 0 : index
    %13 = vector.load %arg7[%c0_9, %c0_10, %c0_11] : memref<1x64x4xf32, #tpu.memory_space<vmem>>, vector<1x64x4xf32>
    %14 = vector.shape_cast %13 : vector<1x64x4xf32> to vector<64x4xf32>
    %cst_12 = arith.constant dense<0.000000e+00> : vector<8x4xf32>
    %15 = tpu.matmul %12, %14, %cst_12 {dimension_numbers = #tpu.dot_dimension_numbers<[1], [0], [0], [1], [0, 0, 1, 1], [], []>} : vector<8x64xf32>, vector<64x4xf32>, vector<8x4xf32> -> vector<8x4xf32>
    %c0_13 = arith.constant 0 : index
    %c0_14 = arith.constant 0 : index
    %c0_15 = arith.constant 0 : index
    %16 = vector.load %arg8[%c0_13, %c0_14, %c0_15] : memref<1x1x4xf32, #tpu.memory_space<vmem>>, vector<1x1x4xf32>
    %17 = vector.shape_cast %16 : vector<1x1x4xf32> to vector<1x4xf32>
    %18 = vector.broadcast %17 : vector<1x4xf32> to vector<8x4xf32>
    %19 = arith.addf %15, %18 : vector<8x4xf32>
    %c0_16 = arith.constant 0 : index
    %c0_17 = arith.constant 0 : index
    %20 = vector.load %arg10[%c0_16, %c0_17] : memref<8x4xf32, #tpu.memory_space<vmem>>, vector<8x4xf32>
    %21 = arith.mulf %20, %19 : vector<8x4xf32>
    %cst_18 = arith.constant dense<0.000000e+00> : vector<8xf32>
    %22 = vector.multi_reduction <add>, %21, %cst_18 [1] : vector<8x4xf32> to vector<8xf32>
    %23 = vector.shape_cast %22 : vector<8xf32> to vector<8x1xf32>
    %24 = tpu.iota {dimensions = array<i32: 1>} : vector<8x128xi32>
    %c0_19 = arith.constant 0 : index
    %c0_20 = arith.constant 0 : index
    %25 = vector.load %arg9[%c0_19, %c0_20] : memref<8x128xf32, #tpu.memory_space<vmem>>, vector<8x128xf32>
    %26 = vector.broadcast %arg1 : i32 to vector<8x128xi32>
    %27 = arith.cmpi eq, %24, %26 : vector<8x128xi32>
    %cst_21 = arith.constant 0.000000e+00 : f32
    %28 = vector.shape_cast %23 : vector<8x1xf32> to vector<8x1xf32>
    %29 = vector.broadcast %28 : vector<8x1xf32> to vector<8x128xf32>
    %30 = vector.broadcast %cst_21 : f32 to vector<8x128xf32>
    %31 = arith.select %27, %29, %30 : vector<8x128xi1>, vector<8x128xf32>
    %32 = arith.addf %25, %31 : vector<8x128xf32>
    %c0_22 = arith.constant 0 : index
    %c0_23 = arith.constant 0 : index
    %33 = vector.load %arg9[%c0_22, %c0_23] : memref<8x128xf32, #tpu.memory_space<vmem>>, vector<8x128xf32>
    tpu.vector_store %arg9[%c0_22, %c0_23], %32 {strides = array<i32>} : memref<8x128xf32, #tpu.memory_space<vmem>>, vector<8x128xf32>,
    return
  }
  func.func @transform_0(%arg0: i32, %arg1: i32) -> (i32, i32) {
    %c0_i32 = arith.constant 0 : i32
    %c0_i32_0 = arith.constant 0 : i32
    return %arg0, %c0_i32 : i32, i32
  }
  func.func @transform_1(%arg0: i32, %arg1: i32) -> (i32, i32) {
    %c0_i32 = arith.constant 0 : i32
    %c0_i32_0 = arith.constant 0 : i32
    %c0_i32_1 = arith.constant 0 : i32
    return %c0_i32, %c0_i32_0 : i32, i32
  }
  func.func @transform_2(%arg0: i32, %arg1: i32) -> (i32, i32) {
    %c0_i32 = arith.constant 0 : i32
    %c0_i32_0 = arith.constant 0 : i32
    %c0_i32_1 = arith.constant 0 : i32
    return %c0_i32, %c0_i32_0 : i32, i32
  }
  func.func @transform_3(%arg0: i32, %arg1: i32) -> (i32, i32, i32) {
    %c0_i32 = arith.constant 0 : i32
    %c0_i32_0 = arith.constant 0 : i32
    %c0_i32_1 = arith.constant 0 : i32
    return %arg1, %c0_i32, %c0_i32_0 : i32, i32, i32
  }
  func.func @transform_4(%arg0: i32, %arg1: i32) -> (i32, i32, i32) {
    %c0_i32 = arith.constant 0 : i32
    %c0_i32_0 = arith.constant 0 : i32
    %c0_i32_1 = arith.constant 0 : i32
    return %arg1, %c0_i32, %c0_i32_0 : i32, i32, i32
  }
  func.func @transform_5(%arg0: i32, %arg1: i32) -> (i32, i32, i32) {
    %c0_i32 = arith.constant 0 : i32
    %c0_i32_0 = arith.constant 0 : i32
    %c0_i32_1 = arith.constant 0 : i32
    return %arg1, %c0_i32, %c0_i32_0 : i32, i32, i32
  }
  func.func @transform_6(%arg0: i32, %arg1: i32) -> (i32, i32, i32) {
    %c0_i32 = arith.constant 0 : i32
    %c0_i32_0 = arith.constant 0 : i32
    %c0_i32_1 = arith.constant 0 : i32
    return %arg1, %c0_i32, %c0_i32_0 : i32, i32, i32
  }
  func.func @transform_7(%arg0: i32, %arg1: i32) -> (i32, i32) {
    %c0_i32 = arith.constant 0 : i32
    %c0_i32_0 = arith.constant 0 : i32
    return %arg0, %c0_i32 : i32, i32
  }
}

</mosaic_0001>

<bundles_post_ra>
// kernel: tpu_custom_call.1
= control target key start
LH: loop header
LB: loop body
LE: loop exit
PB: predicated region body
PF: predicated region fallthrough
CT: control target
= control target key end

     0   :  { %12 = vsyncpa [#allocation4], 0  ;;  %s993_s24 = smov 0   ;;  %s995_s25 = smov 0   ;;  %s1123_s0 = inlined_call_operand.vmem [shape: f32[8,32], index: 0, kind: input, shape index: {}]   ;;  %s1124_s1 = inlined_call_operand.vmem [shape: f32[32,4], index: 1, kind: input, shape index: {}]   ;;  %s1125_s2 = inlined_call_operand.vmem [shape: f32[1,4], index: 2, kind: input, shape index: {}]   ;;  %s1126_s3 = inlined_call_operand.vmem [shape: f32[4,32,64], index: 3, kind: input, shape index: {}]   ;;  %s1127_s4 = inlined_call_operand.vmem [shape: f32[4,1,64], index: 4, kind: input, shape index: {}]   ;;  %s1128_s5 = inlined_call_operand.vmem [shape: f32[4,64,4], index: 5, kind: input, shape index: {}]   ;;  %s1129_s6 = inlined_call_operand.vmem [shape: f32[4,1,4], index: 6, kind: input, shape index: {}]   ;;  %s1130_s7 = inlined_call_operand.hbm [shape: f32[8,128], index: 7, kind: output, shape index: {}]  }
   0x1   :  { %s997_s26 = smov 0  }
   0x2 LB: > { %s745_s27 = sadd.s32 4294967295, %s944_s26   ;;  %s27_s28 = sadd.s32 1, %s940_s25  ;;  %s944_s26 = sphi %s997_s26, %s18_s26   ;;  %s940_s25 = sphi %s995_s25, %s1133_s25   ;;  %s936_s24 = sphi %s993_s24, %s1132_s24  }
   0x3   : > { %p28_p0 = scmp.ge.s32.totalorder %s27_s28, 4  ;;  %p749_p1 = scmp.ge.s32.totalorder %s944_s26, 1 }
   0x4   : > { %p285_p2 = scmp.lt.s32.totalorder %s944_s26, 5 }
   0x5   : > { %s1135_s28 = smov (%p28_p0, %s27_s28), 0 }
   0x6   : > { %p286_p3 = pnand %p749_p1, %p285_p2 }
   0x7   : > { %p331_p4 = scmp.lt.s32.totalorder (!%p286_p3), %s936_s24, 3  ;;  %p754_p5 = scmp.ne.s32.totalorder (!%p286_p3), %s936_s24, 0 }
   0x8   : > { %289 = sbr.rel (%p286_p3) target bundleno = 1158 (0x486), region = 48 }
   0xf   : > { %s1016_s29 = scalar_select %p331_p4, %s936_s24, 3 }
  0x10   : > { %350 = sbr.rel (%p754_p5) target bundleno = 555 (0x22b), region = 52  ;;  %v352_v0 = vld [vmem:[%s1124_s1] sm:$0xff] (!%p754_p5)  ;;  %v353_v1 = vld [vmem:[%s1124_s1 + $0x8] sm:$0xff] (!%p754_p5)  ;;  %v354_v2 = vld [vmem:[%s1124_s1 + $0x10] sm:$0xff] (!%p754_p5)  ;;  %v946_v3 = vmov (!%p754_p5), 0.0|0.0   ;;  %vm947_vm0 = vmmov (!%p754_p5), 0  }
  0x11   : > { %s765_s30 = sshll.u32 %s1016_s29, 5  ;;  %s338_s10 = scalar_lea.vmem %s1127_s4, %s1016_s29  ;;  %827 = vmatprep.subr.bf16.mxu0 (!%p754_p5), %v946_v3  ;;  %v828_v4 = vpack.c.bf16 (!%p754_p5), %v353_v1, %v352_v0  ;;  %v355_v5 = vld [vmem:[%s1124_s1 + $0x18] sm:$0xff] (!%p754_p5)  ;;  %v948_v6 = vmov (!%p754_p5), 0.0   ;;  %v351_v8 = vld [vmem:[%s1123_s0] sm:$0xff] (!%p754_p5)  ;;  %vm363_vm1 = vcmask (!%p754_p5), 261120   ;;  %vm437_vm2 = vcmask (!%p754_p5), 31744  }
  0x12   : > { %s1026_s13 = scalar_lea.vmem %s1126_s3, %s765_s30  ;;  %s766_s14 = sshll.u32 %s1016_s29, 6  ;;  %794 = vmatprep.mubr.msk.f32.mxu0 (!%p754_p5), %vm947_vm0, %v948_v6  ;;  %450 = vst [vmem:[#allocation3] sm:$0xff] (!%p754_p5), %v948_v6  ;;  %v831_v7 = vpack.c.bf16 (!%p754_p5), %v355_v5, %v354_v2  ;;  %v755_v9 = vld [vmem:[%s1125_s2] ss:$0 sm:$0xff] (!%p754_p5) }
  0x13   : > { %s1032_s17 = scalar_lea.vmem %s1128_s5, %s766_s14  ;;  %s346_s20 = scalar_lea.vmem %s1129_s6, %s1016_s29  ;;  %829 = vmatpush3.bf16.msra.mxu0 (!%p754_p5), %v828_v4 }
  0x14   : > { %830 = vmatprep.subr.bf16.mxu0 (!%p754_p5), %v946_v3 }
  0x17   : > { %832 = vmatpush3.bf16.msra.mxu0 %v831_v7 }
  0x1a   : > { %795 = vmatmul.mubr.msk.f32.vlgmr.msra.gmra.mrb[0].mxu0 %vm363_vm1, %v351_v8 }
  0xed   : > { %v433_v10 = vpop.f32.mrb[0].mxu0 }
  0xee   : > { %v434_v11 = vadd.f32 %v755_v9, %v433_v10  ;;  %v796_v12 = vpop.f32.mrb[1].mxu0 }
  0xf0   : > { %v438_v13 = vsel %vm437_vm2, %v434_v11, -inf }
  0xf1   : > { %439 = vmax.xlane.f32.xlu0 %v438_v13 }
 0x17e   : > { %v440_v14 = vpop.xlane.xlu0 %439 }
 0x17f   : > { %v441_v15 = vsub.f32 %v434_v11, %v440_v14 }
 0x181   : > { %v442_v16 = vmul.f32 1.442695, %v441_v15 }
 0x183   : > { %888 = vpow2.f32 %v442_v16 }
 0x18d   : > { %v889_v17 = vpop.eup %888 }
 0x18e   : > { %v444_v18 = vsel %vm437_vm2, %v889_v17, 0.0 }
 0x18f   : > { %445 = vadd.xlane.f32.xlu0 %v444_v18 }
 0x21c   : > { %v446_v19 = vpop.xlane.xlu0 %445 }
 0x21d   : > { %890 = vrcp.f32 %v446_v19 }
 0x227   : > { %v891_v20 = vpop.eup %890 }
 0x228   : > { %v448_v21 = vmul.f32 %v891_v20, %v889_v17 }
 0x22a   : > { %449 = vst.msk [vmem:[#allocation2] sm:$0xff] %vm437_vm2, %v448_v21 }
 0x22b PF: > { %v452_v22 = vld [vmem:[%s1026_s13] sm:$0xff]  ;;  %v453_v23 = vld [vmem:[%s1026_s13 + $0x8] sm:$0xff]  ;;  %v454_v24 = vld [vmem:[%s1026_s13 + $0x10] sm:$0xff]  ;;  %v949_v25 = vmov 0.0|0.0   ;;  %vm950_vm3 = vmmov 0   ;;  %v951_v28 = vmov 0.0   ;;  %v633_v55 = vlaneseq }
 0x22c   : > { %833 = vmatprep.subr.bf16.mxu0 %v949_v25  ;;  %v834_v26 = vpack.c.bf16 %v453_v23, %v452_v22  ;;  %v455_v27 = vld [vmem:[%s1026_s13 + $0x18] sm:$0xff]  ;;  %805 = vmatprep.mubr.msk.f32.mxu0 %vm950_vm3, %v951_v28  ;;  %v538_v29 = vld [vmem:[%s1032_s17] sm:$0xff]  ;;  %v539_v30 = vld [vmem:[%s1032_s17 + $0x8] sm:$0xff]  ;;  %vm463_vm4 = vcmask 261120   ;;  %vm553_vm5 = vcmask 523264   ;;  %vm629_vm6 = vcmask 31744  }
 0x22d   : > { %839 = vmatprep.subr.bf16.mxu1 %v949_v25  ;;  %v540_v31 = vld [vmem:[%s1032_s17 + $0x10] sm:$0xff]  ;;  %v541_v32 = vld [vmem:[%s1032_s17 + $0x18] sm:$0xff]  ;;  %824 = vmatprep.mubr.msk.f32.mxu1 %vm950_vm3, %v951_v28  ;;  %v837_v33 = vpack.c.bf16 %v455_v27, %v454_v24  ;;  %v840_v34 = vpack.c.bf16 %v539_v30, %v538_v29  ;;  %v542_v36 = vld [vmem:[%s1032_s17 + $0x20] sm:$0xff]  ;;  %v634_v56 = vand.u32 127, %v633_v55  ;;  %v636_v57 = vstv %s936_s24  ;;  %p1088_p6 = scmp.eq.s32.totalorder %s745_s27, 3 }
 0x22e   : > { %835 = vmatpush3.bf16.msra.mxu0 %v834_v26  ;;  %v843_v35 = vpack.c.bf16 %v541_v32, %v540_v31  ;;  %v543_v37 = vld [vmem:[%s1032_s17 + $0x28] sm:$0xff]  ;;  %v451_v38 = vld [vmem:[%s1123_s0] sm:$0xff]  ;;  %v544_v40 = vld [vmem:[%s1032_s17 + $0x30] sm:$0xff] }
 0x22f   : > { %836 = vmatprep.subr.bf16.mxu0 %v949_v25  ;;  %841 = vmatpush3.bf16.msra.mxu1 %v840_v34  ;;  %v846_v39 = vpack.c.bf16 %v543_v37, %v542_v36  ;;  %v545_v41 = vld [vmem:[%s1032_s17 + $0x38] sm:$0xff]  ;;  %v757_v43 = vld [vmem:[%s338_s10] ss:$0 sm:$0xff]  ;;  %vm637_vm7 = vcmp.eq.s32.totalorder %v634_v56, %v636_v57  ;;  %v635_v58 = vld [vmem:[#allocation3] sm:$0xff]  ;;  %s952_s10 = smov [#allocation3]  }
 0x230   : > { %842 = vmatprep.subr.bf16.mxu1 %v949_v25  ;;  %v849_v42 = vpack.c.bf16 %v545_v41, %v544_v40  ;;  %v759_v48 = vld [vmem:[%s346_s20] ss:$0 sm:$0xff]  ;;  %s650_s17 = sshll.u32 %s952_s10, 4  ;;  %s651_s17 = int_to_ptr.vmem [resolvable:$true] %s650_s17 }
 0x231   : > { %v627_v50 = vld [vmem:[#allocation2] sm:$0xff]  ;;  %s892_s20 = scalar_lea.vmem %s651_s17, 128  ;;  %p899_p10 = scmp.lt.s32.totalorder %s651_s17, %s651_s17 }
 0x232   : > { %838 = vmatpush3.bf16.msra.mxu0 %v837_v33  ;;  %p893_p7 = scmp.ne.s32.totalorder %s651_s17, %s892_s20  ;;  %p900_p11 = scmp.lt.s32.totalorder %s892_s20, %s892_s20 }
 0x233   : > { %844 = vmatpush3.bf16.msra.mxu1 %v843_v35 }
 0x234   : > { %845 = vmatprep.subr.bf16.mxu1 %v949_v25  ;;  %p894_p8 = pnand %p893_p7, %p1088_p6  ;;  %p901_p12 = por %p900_p11, %p899_p10 }
 0x235   : > { %806 = vmatmul.mubr.msk.f32.vlgmr.msra.gmra.mrb[0].mxu0 %vm463_vm4, %v451_v38 }
 0x236   : > { %p895_p9 = pneg %p894_p8 }
 0x237   : > { %847 = vmatpush3.bf16.msra.mxu1 %v846_v39 }
 0x238   : > { %848 = vmatprep.subr.bf16.mxu1 %v949_v25  ;;  %p902_p13 = pnand %p901_p12, %p895_p9 }
 0x23b   : > { %850 = vmatpush3.bf16.msra.mxu1 %v849_v42 }
 0x308   : > { %v533_v44 = vpop.f32.mrb[0].mxu0 }
 0x309   : > { %v534_v45 = vadd.f32 %v757_v43, %v533_v44  ;;  %v807_v46 = vpop.f32.mrb[1].mxu0 }
 0x30b   : > { %v537_v47 = vmax.f32 %v534_v45, 0.0 }
 0x30d   : > { %825 = vmatmul.mubr.msk.f32.vlgmr.msra.gmra.mrb[0].mxu1 %vm553_vm5, %v537_v47 }
 0x3e0   : > { %v623_v49 = vpop.f32.mrb[0].mxu1 }
 0x3e1   : > { %v624_v51 = vadd.f32 %v759_v48, %v623_v49  ;;  %v826_v52 = vpop.f32.mrb[1].mxu1 }
 0x3e3   : > { %v628_v53 = vmul.f32 %v627_v50, %v624_v51 }
 0x3e5   : > { %v630_v54 = vsel %vm629_vm6, %v628_v53, 0.0 }
 0x3e6   : > { %631 = vadd.xlane.f32.xlu0 %v630_v54 }
 0x473   : > { %v632_v59 = vpop.xlane.xlu0 %631 }
 0x474   : > { %v638_v60 = vsel %vm637_vm7, %v632_v59, 0.0 }
 0x475   : > { %v639_v61 = vadd.f32 %v638_v60, %v635_v58 }
 0x477   : > { %640 = vst [vmem:[#allocation3] sm:$0xff] %v639_v61 }
 0x478   : > { %905 = shalt.err (!%p902_p13)
}
 0x479   : > { %s906_s27 = scalar_lea.hbm %s1130_s7, 128 }
 0x47a   : > { %p907_p0 = scmp.ne.s32.totalorder %s1130_s7, %s906_s27  ;;  %p912_p3 = scmp.lt.u32.totalorder %s906_s27, %s1130_s7 }
 0x47c   : > { %p908_p1 = pnand %p907_p0, %p1088_p6 }
 0x47e   : > { %p909_p2 = pneg %p908_p1 }
 0x480   : > { %p914_p4 = pnand %p912_p3, %p909_p2 }
 0x482   : > { %917 = shalt.err (!%p914_p4)
}
 0x483   : > { %852 = dma.vmem_to_hbm [thread:$0]  (%p1088_p6), %s651_s17, 128, %s1130_s7, [#allocation4]  }
 0x484   : > { %931 = dma.done.wait (%p1088_p6), [#allocation4], 128  }
 0x485   : > { %933 = vsyncadd (%p1088_p6), [#allocation4], 4294967168 }
 0x486 PF: > { %s18_s26 = sadd.s32 1, %s944_s26   ;;  %s1132_s24 = smov %s940_s25 }
 0x487   : > { %p15_p5 = scmp.ge.s32.totalorder %s18_s26, 6   ;;  %s1133_s25 = smov %s1135_s28 }
 0x489   :  { %17 = sbr.rel (!%p15_p5) target bundleno = 2 (0x2), region = 92 }
 0x490   :  { %663 = vsyncpa [#allocation4], 1 }
 0x491   :  { %665 = vsyncpa [#allocation4 + $0x1], 1 }

</bundles_post_ra>
